<compile_context>
chip_gen: v6e
topology: v6e:2x2x1
jax: 0.10.0
libtpu: 0.0.40
codegen_flags: <defaults>
</compile_context>

<pallas_src>
import jax
import jax.numpy as jnp
from jax import lax
from jax.experimental import pallas as pl
from jax.experimental.pallas import tpu as pltpu

IN_FEATURES = 20
NUM_UNITS = 10      # default num_units in MyClassifier
HIDDEN2 = 10
OUT_CLASSES = 2

DEFAULT_TILE_B = 4096   # rows per grid step; ~2 MiB f32 input tile (lane-padded)

# "NT" matmul: contract the last dim of both operands (a @ b.T).
_NT = (((1,), (1,)), ((), ()))


def _pick_tile(batch, requested):
    """Row-tile size: full batch for small B, else a multiple of 128."""
    if requested >= batch:
        return batch                      # single full-array block (always legal)
    return min(batch, max(128, (requested // 128) * 128))


# ----------------------------------------------------------------------------
# Kernel bodies
# ----------------------------------------------------------------------------

def _mlp_rows_kernel(x_ref, w0_ref, b0_ref, w1_ref, b1_ref, w2_ref, b2_ref,
                     out_ref):
    """Batch-major variant. out_ref: (tile_b, 2) f32, PyTorch layout."""
    x = x_ref[...]                                             # (tile_b, 20) f32
    h0 = lax.dot_general(x, w0_ref[...], _NT,
                         preferred_element_type=jnp.float32) + b0_ref[...]
    h0 = jnp.maximum(h0, 0.0)
    # dropout(p=0.5): identity in eval mode
    h1 = lax.dot_general(h0, w1_ref[...], _NT,
                         preferred_element_type=jnp.float32) + b1_ref[...]
    h1 = jnp.maximum(h1, 0.0)
    logits = lax.dot_general(h1, w2_ref[...], _NT,
                             preferred_element_type=jnp.float32) + b2_ref[...]
    # 2-class softmax == sigmoid of the logit difference (no cross-lane reduce):
    #   p1 = 1 / (1 + exp(l0 - l1)),  p0 = 1 - p1  (rows sum to exactly 1)
    z = logits[:, 1:2] - logits[:, 0:1]                        # (tile_b, 1)
    p1 = pl.reciprocal(1.0 + jnp.exp(-z), approx=True)         # EUP slot
    p0 = 1.0 - p1
    col = lax.broadcasted_iota(jnp.int32, out_ref.shape, 1)
    out_ref[...] = jnp.where(col == 0, p0, p1).astype(out_ref.dtype)


def _mlp_classes_kernel(x_ref, w0_ref, b0_ref, w1_ref, b1_ref, w2_ref, b2_ref,
                        out_ref):
    """Feature-major variant. out_ref: (2, tile_b) f32 — batch in lanes.

    The first NT matmul puts the batch dimension into lanes "for free"
    (no explicit transpose); every later activation and the final store are
    lane-dense in batch.
    """
    x = x_ref[...]                                             # (tile_b, 20) f32
    h0 = lax.dot_general(w0_ref[...], x, _NT,                  # (num_units, tile_b)
                         preferred_element_type=jnp.float32) + b0_ref[...]
    h0 = jnp.maximum(h0, 0.0)
    # dropout(p=0.5): identity in eval mode
    h1 = jnp.dot(w1_ref[...], h0,                              # (10, tile_b)
                 preferred_element_type=jnp.float32) + b1_ref[...]
    h1 = jnp.maximum(h1, 0.0)
    logits = jnp.dot(w2_ref[...], h1,                          # (2, tile_b)
                     preferred_element_type=jnp.float32) + b2_ref[...]
    z = logits[1:2, :] - logits[0:1, :]                        # (1, tile_b)
    p1 = pl.reciprocal(1.0 + jnp.exp(-z), approx=True)
    p0 = 1.0 - p1
    row = lax.broadcasted_iota(jnp.int32, out_ref.shape, 0)
    out_ref[...] = jnp.where(row == 0, p0, p1).astype(out_ref.dtype)


# ----------------------------------------------------------------------------
# Wrapper
# ----------------------------------------------------------------------------

def my_classifier_forward(x, params, *, tile_b=None, class_major=False):
    """Fused MLP forward.

    x: (B, 20) float32.
    class_major=False -> (B, 2) float32, exact PyTorch layout.
    class_major=True  -> (2, B) float32, lane-dense in batch (preferred when the
                         consumer can accept class-major probabilities; avoids
                         the 128-lane-padded (B, 2) output slab entirely).
    """
    w0, b0, w1, b1, w2, b2 = params
    B = x.shape[0]
    tile = _pick_tile(B, DEFAULT_TILE_B if tile_b is None else tile_b)
    grid = (pl.cdiv(B, tile),)            # trailing partial block is masked

    def resident(a):
        # Same block every grid step -> stays resident in VMEM.
        return pl.BlockSpec(a.shape, lambda i: (0,) * a.ndim)

    if class_major:
        # Biases as columns: broadcast over the (feat, tile_b) lane axis.
        b0r, b1r, b2r = b0.reshape(-1, 1), b1.reshape(-1, 1), b2.reshape(-1, 1)
        kernel = _mlp_classes_kernel
        out_shape = jax.ShapeDtypeStruct((OUT_CLASSES, B), jnp.float32)
        out_spec = pl.BlockSpec((OUT_CLASSES, tile), lambda i: (0, i))
    else:
        b0r, b1r, b2r = b0.reshape(1, -1), b1.reshape(1, -1), b2.reshape(1, -1)
        kernel = _mlp_rows_kernel
        out_shape = jax.ShapeDtypeStruct((B, OUT_CLASSES), jnp.float32)
        out_spec = pl.BlockSpec((tile, OUT_CLASSES), lambda i: (i, 0))

    flops = 2 * B * (IN_FEATURES * NUM_UNITS
                     + NUM_UNITS * HIDDEN2
                     + HIDDEN2 * OUT_CLASSES)
    bytes_accessed = (x.size * x.dtype.itemsize
                      + B * OUT_CLASSES * 4
                      + sum(int(p.size) * 4 for p in params))
    cost = pl.CostEstimate(flops=flops, transcendentals=B,
                           bytes_accessed=bytes_accessed)

    return pl.pallas_call(
        kernel,
        out_shape=out_shape,
        grid=grid,
        in_specs=[
            pl.BlockSpec((tile, IN_FEATURES), lambda i: (i, 0)),   # streamed rows
            resident(w0), resident(b0r),
            resident(w1), resident(b1r),
            resident(w2), resident(b2r),
        ],
        out_specs=out_spec,
        compiler_params=pltpu.CompilerParams(
            dimension_semantics=("parallel",),        # megacore sharding on v7x
            vmem_limit_bytes=32 * 1024 * 1024,        # headroom over v5e's 16 MiB default
        ),
        cost_estimate=cost,
    )(x, w0, b0r, w1, b1r, w2, b2r)


# ----------------------------------------------------------------------------
# Params & reference
# ----------------------------------------------------------------------------

def init_params(key):
    """PyTorch-Linear-style init, PyTorch layouts: W (out, in), b (out,)."""
    def linear(k, fan_in, fan_out):
        kw, kb = jax.random.split(k)
        bound = 1.0 / jnp.sqrt(jnp.float32(fan_in))
        w = jax.random.uniform(kw, (fan_out, fan_in), jnp.float32, -bound, bound)
        b = jax.random.uniform(kb, (fan_out,), jnp.float32, -bound, bound)
        return w, b

    k0, k1, k2 = jax.random.split(key, 3)
    w0, b0 = linear(k0, IN_FEATURES, NUM_UNITS)
    w1, b1 = linear(k1, NUM_UNITS, HIDDEN2)
    w2, b2 = linear(k2, HIDDEN2, OUT_CLASSES)
    return (w0, b0, w1, b1, w2, b2)


def reference_forward(x, params):
    w0, b0, w1, b1, w2, b2 = params
    h0 = jnp.maximum(x @ w0.T + b0, 0.0)
    h1 = jnp.maximum(h0 @ w1.T + b1, 0.0)
    return jax.nn.softmax(h1 @ w2.T + b2, axis=-1)


if __name__ == "__main__":
    key = jax.random.PRNGKey(0)
    kx, kp = jax.random.split(key)
    params = init_params(kp)

    # Small shapes: a single-block batch, and a multi-step grid with a masked
    # trailing partial block (300 rows, 128-row tiles); both output layouts.
    cases = [
        dict(batch=32, tile_b=None, class_major=False),
        dict(batch=32, tile_b=None, class_major=True),
        dict(batch=300, tile_b=128, class_major=False),
        dict(batch=300, tile_b=128, class_major=True),
    ]
    for c in cases:
        B = c["batch"]
        x = jax.random.normal(kx, (B, IN_FEATURES), jnp.float32)

        out = jax.block_until_ready(
            my_classifier_forward(x, params, tile_b=c["tile_b"],
                                  class_major=c["class_major"]))
        ref = reference_forward(x, params)

        if c["class_major"]:
            assert out.shape == (OUT_CLASSES, B), out.shape
            out_cmp = out.T
        else:
            assert out.shape == (B, OUT_CLASSES), out.shape
            out_cmp = out

        err = float(jnp.max(jnp.abs(out_cmp - ref)))
        # pl.reciprocal(approx=True) adds ~2^-12 relative error; MXU default
        # f32 precision adds a little more — 5e-3 abs is comfortably above both.
        assert jnp.allclose(out_cmp, ref, atol=5e-3, rtol=5e-3), err
        # softmax rows sum to exactly 1 by construction (p0 = 1 - p1)
        assert jnp.allclose(jnp.sum(out_cmp, axis=-1), 1.0, atol=1e-3)

    print("KERNEL_OK")
</pallas_src>

<mosaic_0001>
module attributes {stable_mosaic.version = 11 : i64} {
  func.func @_mlp_rows_kernel(%arg0: i32, %arg1: memref<32x20xf32, #tpu.memory_space<vmem>>, %arg2: memref<10x20xf32, #tpu.memory_space<vmem>>, %arg3: memref<1x10xf32, #tpu.memory_space<vmem>>, %arg4: memref<10x10xf32, #tpu.memory_space<vmem>>, %arg5: memref<1x10xf32, #tpu.memory_space<vmem>>, %arg6: memref<2x10xf32, #tpu.memory_space<vmem>>, %arg7: memref<1x2xf32, #tpu.memory_space<vmem>>, %arg8: memref<32x2xf32, #tpu.memory_space<vmem>>) attributes {dimension_semantics = [#tpu.dimension_semantics<parallel>], iteration_bounds = array<i64: 1>, scalar_prefetch = 0 : i64, scratch_operands = 0 : i64, tpu.core_type = #tpu.core_type<tc>, window_params = [{transform_indices = @transform_0, window_bounds = array<i64: 32, 20>}, {pipeline_mode = #tpu.pipeline_mode<synchronous>, transform_indices = @transform_1, window_bounds = array<i64: 10, 20>}, {pipeline_mode = #tpu.pipeline_mode<synchronous>, transform_indices = @transform_2, window_bounds = array<i64: 1, 10>}, {pipeline_mode = #tpu.pipeline_mode<synchronous>, transform_indices = @transform_3, window_bounds = array<i64: 10, 10>}, {pipeline_mode = #tpu.pipeline_mode<synchronous>, transform_indices = @transform_4, window_bounds = array<i64: 1, 10>}, {pipeline_mode = #tpu.pipeline_mode<synchronous>, transform_indices = @transform_5, window_bounds = array<i64: 2, 10>}, {pipeline_mode = #tpu.pipeline_mode<synchronous>, transform_indices = @transform_6, window_bounds = array<i64: 1, 2>}, {transform_indices = @transform_7, window_bounds = array<i64: 32, 2>}]} {
    %c0 = arith.constant 0 : index
    %c0_0 = arith.constant 0 : index
    %0 = vector.load %arg1[%c0, %c0_0] : memref<32x20xf32, #tpu.memory_space<vmem>>, vector<32x20xf32>
    %c0_1 = arith.constant 0 : index
    %c0_2 = arith.constant 0 : index
    %1 = vector.load %arg2[%c0_1, %c0_2] : memref<10x20xf32, #tpu.memory_space<vmem>>, vector<10x20xf32>
    %cst = arith.constant dense<0.000000e+00> : vector<32x10xf32>
    %2 = tpu.matmul %0, %1, %cst {dimension_numbers = #tpu.dot_dimension_numbers<[1], [1], [0], [0], [0, 0, 1, 0], [], []>} : vector<32x20xf32>, vector<10x20xf32>, vector<32x10xf32> -> vector<32x10xf32>
    %c0_3 = arith.constant 0 : index
    %c0_4 = arith.constant 0 : index
    %3 = vector.load %arg3[%c0_3, %c0_4] : memref<1x10xf32, #tpu.memory_space<vmem>>, vector<1x10xf32>
    %4 = vector.broadcast %3 : vector<1x10xf32> to vector<32x10xf32>
    %5 = arith.addf %2, %4 : vector<32x10xf32>
    %cst_5 = arith.constant 0.000000e+00 : f32
    %6 = vector.broadcast %cst_5 : f32 to vector<32x10xf32>
    %7 = arith.maximumf %5, %6 : vector<32x10xf32>
    %c0_6 = arith.constant 0 : index
    %c0_7 = arith.constant 0 : index
    %8 = vector.load %arg4[%c0_6, %c0_7] : memref<10x10xf32, #tpu.memory_space<vmem>>, vector<10x10xf32>
    %cst_8 = arith.constant dense<0.000000e+00> : vector<32x10xf32>
    %9 = tpu.matmul %7, %8, %cst_8 {dimension_numbers = #tpu.dot_dimension_numbers<[1], [1], [0], [0], [0, 0, 1, 0], [], []>} : vector<32x10xf32>, vector<10x10xf32>, vector<32x10xf32> -> vector<32x10xf32>
    %c0_9 = arith.constant 0 : index
    %c0_10 = arith.constant 0 : index
    %10 = vector.load %arg5[%c0_9, %c0_10] : memref<1x10xf32, #tpu.memory_space<vmem>>, vector<1x10xf32>
    %11 = vector.broadcast %10 : vector<1x10xf32> to vector<32x10xf32>
    %12 = arith.addf %9, %11 : vector<32x10xf32>
    %cst_11 = arith.constant 0.000000e+00 : f32
    %13 = vector.broadcast %cst_11 : f32 to vector<32x10xf32>
    %14 = arith.maximumf %12, %13 : vector<32x10xf32>
    %c0_12 = arith.constant 0 : index
    %c0_13 = arith.constant 0 : index
    %15 = vector.load %arg6[%c0_12, %c0_13] : memref<2x10xf32, #tpu.memory_space<vmem>>, vector<2x10xf32>
    %cst_14 = arith.constant dense<0.000000e+00> : vector<32x2xf32>
    %16 = tpu.matmul %14, %15, %cst_14 {dimension_numbers = #tpu.dot_dimension_numbers<[1], [1], [0], [0], [0, 0, 1, 0], [], []>} : vector<32x10xf32>, vector<2x10xf32>, vector<32x2xf32> -> vector<32x2xf32>
    %c0_15 = arith.constant 0 : index
    %c0_16 = arith.constant 0 : index
    %17 = vector.load %arg7[%c0_15, %c0_16] : memref<1x2xf32, #tpu.memory_space<vmem>>, vector<1x2xf32>
    %18 = vector.broadcast %17 : vector<1x2xf32> to vector<32x2xf32>
    %19 = arith.addf %16, %18 : vector<32x2xf32>
    %20 = vector.extract_strided_slice %19 {offsets = [0, 1], sizes = [32, 1], strides = [1, 1]} : vector<32x2xf32> to vector<32x1xf32>
    %21 = vector.extract_strided_slice %19 {offsets = [0, 0], sizes = [32, 1], strides = [1, 1]} : vector<32x2xf32> to vector<32x1xf32>
    %22 = arith.subf %20, %21 : vector<32x1xf32>
    %cst_17 = arith.constant 0.000000e+00 : f32
    %23 = vector.broadcast %cst_17 : f32 to vector<32x1xf32>
    %24 = arith.subf %23, %22 : vector<32x1xf32>
    %25 = math.exp %24 : vector<32x1xf32>
    %cst_18 = arith.constant 1.000000e+00 : f32
    %26 = vector.broadcast %cst_18 : f32 to vector<32x1xf32>
    %27 = arith.addf %26, %25 : vector<32x1xf32>
    %28 = tpu.reciprocal %27 {approx = true} : vector<32x1xf32> -> vector<32x1xf32>
    %cst_19 = arith.constant 1.000000e+00 : f32
    %29 = vector.broadcast %cst_19 : f32 to vector<32x1xf32>
    %30 = arith.subf %29, %28 : vector<32x1xf32>
    %31 = tpu.iota {dimensions = array<i32: 1>} : vector<32x2xi32>
    %c0_i32 = arith.constant 0 : i32
    %32 = vector.broadcast %c0_i32 : i32 to vector<32x2xi32>
    %33 = arith.cmpi eq, %31, %32 : vector<32x2xi32>
    %34 = vector.shape_cast %30 : vector<32x1xf32> to vector<32x1xf32>
    %35 = vector.broadcast %34 : vector<32x1xf32> to vector<32x2xf32>
    %36 = vector.shape_cast %28 : vector<32x1xf32> to vector<32x1xf32>
    %37 = vector.broadcast %36 : vector<32x1xf32> to vector<32x2xf32>
    %38 = arith.select %33, %35, %37 : vector<32x2xi1>, vector<32x2xf32>
    %c0_20 = arith.constant 0 : index
    %c0_21 = arith.constant 0 : index
    %39 = vector.load %arg8[%c0_20, %c0_21] : memref<32x2xf32, #tpu.memory_space<vmem>>, vector<32x2xf32>
    tpu.vector_store %arg8[%c0_20, %c0_21], %38 {strides = array<i32>} : memref<32x2xf32, #tpu.memory_space<vmem>>, vector<32x2xf32>,
    return
  }
  func.func @transform_0(%arg0: i32) -> (i32, i32) {
    %c0_i32 = arith.constant 0 : i32
    %c0_i32_0 = arith.constant 0 : i32
    return %arg0, %c0_i32 : i32, i32
  }
  func.func @transform_1(%arg0: i32) -> (i32, i32) {
    %c0_i32 = arith.constant 0 : i32
    %c0_i32_0 = arith.constant 0 : i32
    %c0_i32_1 = arith.constant 0 : i32
    return %c0_i32, %c0_i32_0 : i32, i32
  }
  func.func @transform_2(%arg0: i32) -> (i32, i32) {
    %c0_i32 = arith.constant 0 : i32
    %c0_i32_0 = arith.constant 0 : i32
    %c0_i32_1 = arith.constant 0 : i32
    return %c0_i32, %c0_i32_0 : i32, i32
  }
  func.func @transform_3(%arg0: i32) -> (i32, i32) {
    %c0_i32 = arith.constant 0 : i32
    %c0_i32_0 = arith.constant 0 : i32
    %c0_i32_1 = arith.constant 0 : i32
    return %c0_i32, %c0_i32_0 : i32, i32
  }
  func.func @transform_4(%arg0: i32) -> (i32, i32) {
    %c0_i32 = arith.constant 0 : i32
    %c0_i32_0 = arith.constant 0 : i32
    %c0_i32_1 = arith.constant 0 : i32
    return %c0_i32, %c0_i32_0 : i32, i32
  }
  func.func @transform_5(%arg0: i32) -> (i32, i32) {
    %c0_i32 = arith.constant 0 : i32
    %c0_i32_0 = arith.constant 0 : i32
    %c0_i32_1 = arith.constant 0 : i32
    return %c0_i32, %c0_i32_0 : i32, i32
  }
  func.func @transform_6(%arg0: i32) -> (i32, i32) {
    %c0_i32 = arith.constant 0 : i32
    %c0_i32_0 = arith.constant 0 : i32
    %c0_i32_1 = arith.constant 0 : i32
    return %c0_i32, %c0_i32_0 : i32, i32
  }
  func.func @transform_7(%arg0: i32) -> (i32, i32) {
    %c0_i32 = arith.constant 0 : i32
    %c0_i32_0 = arith.constant 0 : i32
    return %arg0, %c0_i32 : i32, i32
  }
}

</mosaic_0001>

<bundles_post_ra>
// kernel: tpu_custom_call.1
= control target key start
LH: loop header
LB: loop body
LE: loop exit
PB: predicated region body
PF: predicated region fallthrough
CT: control target
= control target key end

     0   :  { %vm39_vm0 = vcmask 162816   ;;  %vm156_vm1 = vcmask 80896   ;;  %s559_s19 = smov 1   ;;  %v560_v44 = vmov 1   ;;  %vm463_vm3 = vcmask 15360   ;;  %s669_s1 = inlined_call_operand.vmem [shape: f32[10,20], index: 1, kind: input, shape index: {}]   ;;  %s670_s0 = inlined_call_operand.vmem [shape: f32[32,20], index: 0, kind: input, shape index: {}]   ;;  %s671_s3 = inlined_call_operand.vmem [shape: f32[10,10], index: 3, kind: input, shape index: {}]   ;;  %s672_s5 = inlined_call_operand.vmem [shape: f32[2,10], index: 5, kind: input, shape index: {}]   ;;  %s673_s2 = inlined_call_operand.vmem [shape: f32[1,10], index: 2, kind: input, shape index: {}]   ;;  %s674_s4 = inlined_call_operand.vmem [shape: f32[1,10], index: 4, kind: input, shape index: {}]   ;;  %s675_s6 = inlined_call_operand.vmem [shape: f32[1,2], index: 6, kind: input, shape index: {}]   ;;  %s676_s7 = inlined_call_operand.vmem [shape: f32[32,2], index: 7, kind: output, shape index: {}]  }
   0x1   :  { %v30_v0 = vld [vmem:[%s669_s1] sm:$0xff]  ;;  %v31_v1 = vld [vmem:[%s669_s1 + $0x8] sm:$0x3]  ;;  %v28_v4 = vld [vmem:[%s670_s0 + $0x10] sm:$0xff]  ;;  %541 = vset.pattern.permute.xlu0 %v560_v44  ;;  %542 = vset.pattern.permute.xlu1 %v560_v44 }
   0x2   :  { %v26_v2 = vld [vmem:[%s670_s0] sm:$0xff]  ;;  %509 = vmatprep.subr.msk.mxu0 %vm39_vm0, %v31_v1  ;;  %v27_v3 = vld [vmem:[%s670_s0 + $0x8] sm:$0xff]  ;;  %v29_v5 = vld [vmem:[%s670_s0 + $0x18] sm:$0xff] }
   0x3   :  { %513 = vmatprep.mubr.msk.f32.mxu0 %vm39_vm0, %v26_v2  ;;  %510 = vmatpush3.xpose.msk.msra.mxu0 %vm39_vm0, %v31_v1  ;;  %v148_v6 = vld [vmem:[%s671_s3 + $0x8] sm:$0x3]  ;;  %v147_v7 = vld [vmem:[%s671_s3] sm:$0xff] }
   0x4   :  { %511 = vmatprep.subr.msk.mxu0 %vm39_vm0, %v30_v0  ;;  %519 = vmatprep.subr.msk.mxu1 %vm156_vm1, %v148_v6  ;;  %v264_v8 = vld [vmem:[%s672_s5] sm:$0x3] }
   0x5   :  { %520 = vmatpush3.xpose.msk.msra.mxu1 %vm156_vm1, %v148_v6  ;;  %v472_v9 = vld [vmem:[%s673_s2] ss:$0 sm:$0xff] }
   0x6   :  { %521 = vmatprep.subr.msk.mxu1 %vm156_vm1, %v147_v7  ;;  %v479_v22 = vld [vmem:[%s674_s4] ss:$0 sm:$0xff] }
   0x7   :  { %512 = vmatpush3.xpose.msk.msra.mxu0 %vm39_vm0, %v30_v0  ;;  %v486_v36 = vld [vmem:[%s675_s6] ss:$0 sm:$0xff] }
   0x8   :  { %529 = vmatprep.subr.msk.mxu0 %vm156_vm1, %v264_v8 }
   0x9   :  { %522 = vmatpush3.xpose.msk.msra.mxu1 %vm156_vm1, %v147_v7 }
   0xa   :  { %514 = vmatmul.mubr.msk.f32.vlgmr.msra.gmra.mxu0 %vm39_vm0, %v27_v3  ;;  %537 = vmatprep.subr.msk.mxu1 %vm156_vm1, %v264_v8 }
   0xb   :  { %516 = vmatprep.mubr.msk.f32.mxu0 %vm39_vm0, %v28_v4  ;;  %530 = vmatpush3.xpose.msk.msra.mxu0 %vm156_vm1, %v264_v8 }
   0xe   :  { %517 = vmatmul.mubr.msk.f32.gmra.mxu0 %vm39_vm0, %v29_v5 }
  0xca   :  { %v515_v10 = vpop.f32.mrf.mxu0 }
  0xcb   :  { %v130_v11 = vadd.f32 %v515_v10, %v472_v9 }
  0xcc   :  { %v124_v12 = vpop.f32.mrf.mxu0 }
  0xcd   :  { %v125_v13 = vadd.f32 %v472_v9, %v124_v12  ;;  %v144_v17 = vmax.f32 %v130_v11, 0.0 }
  0xce   :  { %v518_v14 = vpop.f32.mrf.mxu0 }
  0xcf   :  { %v143_v15 = vmax.f32 %v125_v13, 0.0  ;;  %v140_v16 = vadd.f32 %v518_v14, %v472_v9  ;;  %v416_v13 = vlaneseq }
  0xd0   :  { %v134_v18 = vpop.f32.mrf.mxu0 }
  0xd1   :  { %v135_v19 = vadd.f32 %v472_v9, %v134_v18  ;;  %523 = vmatprep.mubr.msk.f32.mxu1 %vm156_vm1, %v143_v15  ;;  %v146_v20 = vmax.f32 %v140_v16, 0.0  ;;  %v417_v14 = vand.u32 127, %v416_v13 }
  0xd2   :  { %524 = vmatmul.mubr.msk.f32.vlgmr.msra.gmra.mxu1 %vm156_vm1, %v144_v17 }
  0xd3   :  { %v145_v21 = vmax.f32 %v135_v19, 0.0  ;;  %538 = vmatpush3.xpose.msk.msra.mxu1 %vm156_vm1, %v264_v8  ;;  %vm418_vm2 = vcmp.eq.s32.totalorder %v417_v14, 0 }
  0xd5   :  { %526 = vmatprep.mubr.msk.f32.mxu1 %vm156_vm1, %v145_v21 }
  0xd6   :  { %527 = vmatmul.mubr.msk.f32.gmra.mxu1 %vm156_vm1, %v146_v20 }
 0x192   :  { %v525_v23 = vpop.f32.mrf.mxu1 }
 0x193   :  { %v247_v24 = vadd.f32 %v525_v23, %v479_v22 }
 0x194   :  { %v241_v25 = vpop.f32.mrf.mxu1 }
 0x195   :  { %v242_v26 = vadd.f32 %v479_v22, %v241_v25  ;;  %v261_v29 = vmax.f32 %v247_v24, 0.0 }
 0x196   :  { %v528_v27 = vpop.f32.mrf.mxu1 }
 0x197   :  { %v260_v28 = vmax.f32 %v242_v26, 0.0  ;;  %v257_v30 = vadd.f32 %v528_v27, %v479_v22 }
 0x198   :  { %v251_v31 = vpop.f32.mrf.mxu1 }
 0x199   :  { %v252_v32 = vadd.f32 %v479_v22, %v251_v31  ;;  %531 = vmatprep.mubr.msk.f32.mxu0 %vm156_vm1, %v260_v28  ;;  %v263_v34 = vmax.f32 %v257_v30, 0.0 }
 0x19a   :  { %532 = vmatmul.mubr.msk.f32.vlgmr.msra.gmra.mxu0 %vm156_vm1, %v261_v29 }
 0x19b   :  { %v262_v33 = vmax.f32 %v252_v32, 0.0 }
 0x19d   :  { %534 = vmatprep.mubr.msk.f32.mxu1 %vm156_vm1, %v262_v33 }
 0x19e   :  { %535 = vmatmul.mubr.msk.f32.vlgmr.msra.gmra.mxu1 %vm156_vm1, %v263_v34 }
 0x25a   :  { %v533_v35 = vpop.f32.mrf.mxu0 }
 0x25b   :  { %v359_v41 = vadd.f32 %v533_v35, %v486_v36 }
 0x25c   :  { %v353_v37 = vpop.f32.mrf.mxu0 }
 0x25d   :  { %v354_v38 = vadd.f32 %v486_v36, %v353_v37 }
 0x25e   :  { %v536_v39 = vpop.f32.mrf.mxu1 }
 0x25f   :  { %376 = vrot.lane.b32.xlu0 %v354_v38, %s559_s19  ;;  %v369_v43 = vadd.f32 %v536_v39, %v486_v36 }
 0x260   :  { %v363_v40 = vpop.f32.mrf.mxu1 }
 0x261   :  { %v364_v42 = vadd.f32 %v486_v36, %v363_v40 }
 0x263   :  { %380 = vrot.lane.b32.xlu1 %v364_v42, %s559_s19  ;;  %378 = vrot.lane.b32.xlu0 %v359_v41, %s559_s19 }
 0x267   :  { %382 = vrot.lane.b32.xlu1 %v369_v43, %s559_s19 }
 0x2d1   :  { %v377_v45 = vpop.permute.xlu0 %376 }
 0x2d2   :  { %v388_v46 = vsub.f32 %v354_v38, %v377_v45 }
 0x2d4   :  { %v392_v47 = vsub.f32 0.0, %v388_v46 }
 0x2d5   :  { %v381_v48 = vpop.permute.xlu1 %380  ;;  %v379_v49 = vpop.permute.xlu0 %378 }
 0x2d6   :  { %v396_v50 = vmul.f32 1.442695, %v392_v47  ;;  %v390_v51 = vsub.f32 %v364_v42, %v381_v48  ;;  %v389_v52 = vsub.f32 %v359_v41, %v379_v49 }
 0x2d8   :  { %543 = vpow2.f32 %v396_v50  ;;  %v394_v53 = vsub.f32 0.0, %v390_v51  ;;  %v393_v54 = vsub.f32 0.0, %v389_v52 }
 0x2d9   :  { %v383_v55 = vpop.permute.xlu1 %382 }
 0x2da   :  { %v398_v56 = vmul.f32 1.442695, %v393_v54  ;;  %v391_v57 = vsub.f32 %v369_v43, %v383_v55  ;;  %v400_v58 = vmul.f32 1.442695, %v394_v53 }
 0x2dc   :  { %v395_v59 = vsub.f32 0.0, %v391_v57  ;;  %545 = vpow2.f32 %v398_v56 }
 0x2dd   :  { %547 = vpow2.f32 %v400_v58 }
 0x2de   :  { %v402_v60 = vmul.f32 1.442695, %v395_v59 }
 0x2e0   :  { %549 = vpow2.f32 %v402_v60 }
 0x2e5   :  { %v544_v61 = vpop.eup %543 }
 0x2e6   :  { %v404_v62 = vadd.f32 1.0, %v544_v61 }
 0x2e8   :  { %551 = vrcp.f32 %v404_v62 }
 0x2e9   :  { %v546_v63 = vpop.eup %545 }
 0x2ea   :  { %v405_v0 = vadd.f32 1.0, %v546_v63  ;;  %v548_v1 = vpop.eup %547 }
 0x2eb   :  { %v406_v4 = vadd.f32 1.0, %v548_v1 }
 0x2ec   :  { %553 = vrcp.f32 %v405_v0 }
 0x2ed   :  { %v550_v2 = vpop.eup %549 }
 0x2ee   :  { %v407_v3 = vadd.f32 1.0, %v550_v2 }
 0x2f0   :  { %555 = vrcp.f32 %v407_v3 }
 0x2f1   :  { %557 = vrcp.f32 %v406_v4 }
 0x2f5   :  { %v552_v5 = vpop.eup %551 }
 0x2f6   :  { %v412_v8 = vsub.f32 1.0, %v552_v5 }
 0x2f9   :  { %v554_v6 = vpop.eup %553 }
 0x2fa   :  { %446 = vperm.xlu0 %541, %v554_v6   ;;  %v413_v7 = vsub.f32 1.0, %v554_v6 }
 0x2fc   :  { %426 = vperm.xlu1 %542, %v413_v7  }
 0x2fd   :  { %v556_v9 = vpop.eup %555 }
 0x2fe   :  { %421 = vperm.xlu0 %541, %v412_v8   ;;  %v558_v10 = vpop.eup %557  ;;  %v415_v11 = vsub.f32 1.0, %v556_v9 }
 0x2ff   :  { %v414_v12 = vsub.f32 1.0, %v558_v10 }
 0x300   :  { %441 = vperm.xlu1 %542, %v552_v5  }
 0x302   :  { %436 = vperm.xlu0 %541, %v415_v11  }
 0x304   :  { %431 = vperm.xlu1 %542, %v414_v12  }
 0x306   :  { %456 = vperm.xlu0 %541, %v556_v9  }
 0x308   :  { %451 = vperm.xlu1 %542, %v558_v10  }
 0x375   :  { %v447_v15 = vpop.permute.xlu0 %446 }
 0x377   :  { %v427_v16 = vpop.permute.xlu1 %426 }
 0x378   :  { %v460_v17 = vsel %vm418_vm2, %v427_v16, %v447_v15 }
 0x379   :  { %465 = vst.msk [vmem:[%s676_s7 + $0x8] sm:$0xff] %vm463_vm3, %v460_v17  ;;  %v422_v18 = vpop.permute.xlu0 %421 }
 0x37b   :  { %v442_v19 = vpop.permute.xlu1 %441 }
 0x37c   :  { %v459_v20 = vsel %vm418_vm2, %v422_v18, %v442_v19 }
 0x37d   :  { %464 = vst.msk [vmem:[%s676_s7] sm:$0xff] %vm463_vm3, %v459_v20  ;;  %v437_v21 = vpop.permute.xlu0 %436 }
 0x37f   :  { %v432_v22 = vpop.permute.xlu1 %431 }
 0x381   :  { %v457_v23 = vpop.permute.xlu0 %456 }
 0x382   :  { %v462_v24 = vsel %vm418_vm2, %v437_v21, %v457_v23 }
 0x383   :  { %467 = vst.msk [vmem:[%s676_s7 + $0x18] sm:$0xff] %vm463_vm3, %v462_v24  ;;  %v452_v25 = vpop.permute.xlu1 %451 }
 0x384   :  { %v461_v26 = vsel %vm418_vm2, %v432_v22, %v452_v25 }
 0x385   :  { %466 = vst.msk [vmem:[%s676_s7 + $0x10] sm:$0xff] %vm463_vm3, %v461_v26 }

</bundles_post_ra>
